<compile_context>
chip_gen: v7x
topology: tpu7x:2x2x1
jax: 0.10.0
libtpu: 0.0.40
codegen_flags: <defaults>
</compile_context>

<pallas_src>
import functools

import jax
import jax.numpy as jnp
from jax.experimental import pallas as pl
from jax.experimental.pallas import tpu as pltpu


def _mlm_head_kernel(x_ref, w1_ref, b1_ref, gamma_ref, beta_ref,
                     w2_ref, b2_ref, out_ref, h_ref, *, eps):
    # Recompute dense + GELU + LayerNorm only on the first vocab tile of each
    # row tile; the result persists in the VMEM scratch h_ref for the rest.
    @pl.when(pl.program_id(1) == 0)
    def _():
        # Dense: (tm, F) @ (F, H) on the MXU with f32 accumulation.
        h = jnp.dot(x_ref[...], w1_ref[...],
                    preferred_element_type=jnp.float32) + b1_ref[...]

        # Exact (erf) GELU, matching transformers' "gelu" activation.
        h = 0.5 * h * (1.0 + jax.lax.erf(h * 0.7071067811865476))

        # LayerNorm over the hidden (last) axis, affine, f32 math.
        mean = jnp.mean(h, axis=-1, keepdims=True)
        centered = h - mean
        var = jnp.mean(centered * centered, axis=-1, keepdims=True)
        h = centered * jax.lax.rsqrt(var + eps) * gamma_ref[...] + beta_ref[...]

        h_ref[...] = h.astype(h_ref.dtype)

    # Decoder: (tm, H) @ (H, tn) + (1, tn) for the current vocab tile.
    scores = jnp.dot(h_ref[...], w2_ref[...],
                     preferred_element_type=jnp.float32) + b2_ref[...]
    out_ref[...] = scores.astype(out_ref.dtype)


def _const_spec(block_shape, index_map):
    """BlockSpec for grid-invariant inputs; single-buffered when supported."""
    try:
        return pl.BlockSpec(block_shape, index_map, pipeline_mode=pl.Buffered(1))
    except (TypeError, AttributeError):
        return pl.BlockSpec(block_shape, index_map)


def tabformer_mlm_head(x, w_dense, b_dense, gamma, beta, w_dec, b_dec, *,
                       eps=1e-12, tm=512, tn=512,
                       compute_dtype=jnp.bfloat16, out_dtype=jnp.bfloat16):
    """x: (B, S, F). Weights stored transposed for right-multiply:
       w_dense: (F, H), w_dec: (H, V). Returns (B, S, V) in out_dtype."""
    B, S, F = x.shape
    H = w_dense.shape[1]
    V = w_dec.shape[1]
    M = B * S

    # Row tile: use the whole row range when small (block == full dim is always
    # layout-legal); otherwise keep the MXU-friendly 512 (multiple of 256).
    tm = M if M <= tm else tm
    # Vocab tile: same idea. Ragged last tiles are handled by the cdiv grid
    # (masked edge blocks), so no weight/output padding pass is needed.
    tn = V if V <= tn else tn

    grid = (pl.cdiv(M, tm), pl.cdiv(V, tn))

    # Flatten rows; cast matmul operands to the MXU compute dtype only when
    # needed (skip the full-weight pass if the caller pre-casts).
    x2 = x.reshape(M, F)
    if x2.dtype != compute_dtype:
        x2 = x2.astype(compute_dtype)
    w1 = w_dense if w_dense.dtype == compute_dtype else w_dense.astype(compute_dtype)
    w2 = w_dec if w_dec.dtype == compute_dtype else w_dec.astype(compute_dtype)
    b1 = b_dense.reshape(1, H).astype(jnp.float32)
    g = gamma.reshape(1, H).astype(jnp.float32)
    bt = beta.reshape(1, H).astype(jnp.float32)
    b2 = b_dec.reshape(1, V).astype(jnp.float32)

    # VMEM budget: double-buffered streamed tiles + single-buffered constants
    # + persistent scratch, 1.5x headroom, capped at 7/8 of physical VMEM.
    bpe_c = jnp.dtype(compute_dtype).itemsize
    bpe_o = jnp.dtype(out_dtype).itemsize
    est = (2 * tm * F * bpe_c          # x row tile (double-buffered)
           + F * H * bpe_c             # dense weight (single-buffered)
           + 2 * H * tn * bpe_c        # decoder weight tile
           + 2 * tm * tn * bpe_o       # output tile
           + tm * H * bpe_c            # h scratch
           + 2 * (3 * H + 2 * tn) * 4)  # biases / LN params
    vmem_cap = 64 * 1024 * 1024
    try:
        vmem_cap = int(getattr(pltpu.get_tpu_info(), "vmem_capacity_bytes",
                               vmem_cap))
    except Exception:
        pass
    vmem_limit = int(min(max(est * 3 // 2, 16 * 1024 * 1024),
                         vmem_cap * 7 // 8))

    kernel = functools.partial(_mlm_head_kernel, eps=float(eps))

    out = pl.pallas_call(
        kernel,
        out_shape=jax.ShapeDtypeStruct((M, V), out_dtype),
        grid_spec=pltpu.PrefetchScalarGridSpec(
            num_scalar_prefetch=0,
            grid=grid,
            in_specs=[
                pl.BlockSpec((tm, F), lambda i, j: (i, 0)),   # x row tile
                _const_spec((F, H), lambda i, j: (0, 0)),     # dense weight
                _const_spec((1, H), lambda i, j: (0, 0)),     # dense bias
                _const_spec((1, H), lambda i, j: (0, 0)),     # LN gamma
                _const_spec((1, H), lambda i, j: (0, 0)),     # LN beta
                pl.BlockSpec((H, tn), lambda i, j: (0, j)),   # decoder weight tile
                pl.BlockSpec((1, tn), lambda i, j: (0, j)),   # decoder bias tile
            ],
            out_specs=pl.BlockSpec((tm, tn), lambda i, j: (i, j)),
            scratch_shapes=[pltpu.VMEM((tm, H), compute_dtype)],
        ),
        compiler_params=pltpu.CompilerParams(
            dimension_semantics=("parallel", "arbitrary"),
            vmem_limit_bytes=vmem_limit),
    )(x2, w1, b1, g, bt, w2, b2)

    return out.reshape(B, S, V)


def _reference(x, w_dense, b_dense, gamma, beta, w_dec, b_dec, eps=1e-12):
    h = jnp.einsum("bsf,fh->bsh", x, w_dense) + b_dense
    h = 0.5 * h * (1.0 + jax.lax.erf(h / jnp.sqrt(2.0)))
    mu = jnp.mean(h, axis=-1, keepdims=True)
    var = jnp.mean((h - mu) ** 2, axis=-1, keepdims=True)
    h = (h - mu) * jax.lax.rsqrt(var + eps) * gamma + beta
    return jnp.einsum("bsh,hv->bsv", h, w_dec) + b_dec


if __name__ == "__main__":
    # Small, deterministic config: batch=2, seq=8, field_hidden=32,
    # hidden=64, vocab=128.
    B, S, F, H, V = 2, 8, 32, 64, 128
    key = jax.random.PRNGKey(0)
    k_x, k_w1, k_b1, k_g, k_bt, k_w2 = jax.random.split(key, 6)

    x = jax.random.normal(k_x, (B, S, F), jnp.float32)
    w_dense = jax.random.normal(k_w1, (F, H), jnp.float32) * 0.05
    b_dense = jax.random.normal(k_b1, (H,), jnp.float32) * 0.01
    gamma = 1.0 + 0.1 * jax.random.normal(k_g, (H,), jnp.float32)
    beta = 0.1 * jax.random.normal(k_bt, (H,), jnp.float32)
    w_dec = jax.random.normal(k_w2, (H, V), jnp.float32) * 0.05
    b_dec = jnp.zeros((V,), jnp.float32)  # decoder bias initialized to zeros, like the module

    out = tabformer_mlm_head(x, w_dense, b_dense, gamma, beta, w_dec, b_dec)
    out = jax.block_until_ready(out)

    ref = _reference(x, w_dense, b_dense, gamma, beta, w_dec, b_dec)
    assert out.shape == (B, S, V)
    # Tolerance accounts for bf16 MXU inputs and bf16 score writeback
    # (f32 accumulation / f32 LayerNorm math inside the kernel).
    assert jnp.allclose(out.astype(jnp.float32), ref, atol=3e-2, rtol=3e-2), \
        "mismatch vs reference"

    print("KERNEL_OK")
</pallas_src>

<mosaic_0001>
module attributes {stable_mosaic.version = 11 : i64} {
  func.func @_mlm_head_kernel(%arg0: i32, %arg1: i32, %arg2: memref<16x32xbf16, #tpu.memory_space<vmem>>, %arg3: memref<32x64xbf16, #tpu.memory_space<vmem>>, %arg4: memref<1x64xf32, #tpu.memory_space<vmem>>, %arg5: memref<1x64xf32, #tpu.memory_space<vmem>>, %arg6: memref<1x64xf32, #tpu.memory_space<vmem>>, %arg7: memref<64x128xbf16, #tpu.memory_space<vmem>>, %arg8: memref<1x128xf32, #tpu.memory_space<vmem>>, %arg9: memref<16x128xbf16, #tpu.memory_space<vmem>>, %arg10: memref<16x64xbf16, #tpu.memory_space<vmem>>) attributes {dimension_semantics = [#tpu.dimension_semantics<parallel>, #tpu.dimension_semantics<arbitrary>], iteration_bounds = array<i64: 1, 1>, scalar_prefetch = 0 : i64, scratch_operands = 1 : i64, tpu.core_type = #tpu.core_type<tc>, window_params = [{transform_indices = @transform_0, window_bounds = array<i64: 16, 32>}, {pipeline_mode = #tpu.pipeline_mode<synchronous>, transform_indices = @transform_1, window_bounds = array<i64: 32, 64>}, {pipeline_mode = #tpu.pipeline_mode<synchronous>, transform_indices = @transform_2, window_bounds = array<i64: 1, 64>}, {pipeline_mode = #tpu.pipeline_mode<synchronous>, transform_indices = @transform_3, window_bounds = array<i64: 1, 64>}, {pipeline_mode = #tpu.pipeline_mode<synchronous>, transform_indices = @transform_4, window_bounds = array<i64: 1, 64>}, {transform_indices = @transform_5, window_bounds = array<i64: 64, 128>}, {transform_indices = @transform_6, window_bounds = array<i64: 1, 128>}, {transform_indices = @transform_7, window_bounds = array<i64: 16, 128>}]} {
    %c0_i32 = arith.constant 0 : i32
    %0 = arith.cmpi eq, %arg1, %c0_i32 : i32
    %1 = arith.extui %0 : i1 to i32
    %c0_i32_0 = arith.constant 0 : i32
    %2 = arith.cmpi ne, %1, %c0_i32_0 : i32
    scf.if %2 {
      %c0_8 = arith.constant 0 : index
      %c0_9 = arith.constant 0 : index
      %11 = vector.load %arg2[%c0_8, %c0_9] : memref<16x32xbf16, #tpu.memory_space<vmem>>, vector<16x32xbf16>
      %c0_10 = arith.constant 0 : index
      %c0_11 = arith.constant 0 : index
      %12 = vector.load %arg3[%c0_10, %c0_11] : memref<32x64xbf16, #tpu.memory_space<vmem>>, vector<32x64xbf16>
      %cst_12 = arith.constant dense<0.000000e+00> : vector<16x64xf32>
      %13 = tpu.matmul %11, %12, %cst_12 {dimension_numbers = #tpu.dot_dimension_numbers<[1], [0], [0], [1], [0, 0, 1, 1], [], []>} : vector<16x32xbf16>, vector<32x64xbf16>, vector<16x64xf32> -> vector<16x64xf32>
      %c0_13 = arith.constant 0 : index
      %c0_14 = arith.constant 0 : index
      %14 = vector.load %arg4[%c0_13, %c0_14] : memref<1x64xf32, #tpu.memory_space<vmem>>, vector<1x64xf32>
      %15 = vector.broadcast %14 : vector<1x64xf32> to vector<16x64xf32>
      %16 = arith.addf %13, %15 : vector<16x64xf32>
      %cst_15 = arith.constant 5.000000e-01 : f32
      %17 = vector.broadcast %cst_15 : f32 to vector<16x64xf32>
      %18 = arith.mulf %17, %16 : vector<16x64xf32>
      %cst_16 = arith.constant 0.707106769 : f32
      %19 = vector.broadcast %cst_16 : f32 to vector<16x64xf32>
      %20 = arith.mulf %16, %19 : vector<16x64xf32>
      %21 = math.erf %20 : vector<16x64xf32>
      %cst_17 = arith.constant 1.000000e+00 : f32
      %22 = vector.broadcast %cst_17 : f32 to vector<16x64xf32>
      %23 = arith.addf %22, %21 : vector<16x64xf32>
      %24 = arith.mulf %18, %23 : vector<16x64xf32>
      %cst_18 = arith.constant dense<0.000000e+00> : vector<16xf32>
      %25 = vector.multi_reduction <add>, %24, %cst_18 [1] : vector<16x64xf32> to vector<16xf32>
      %26 = vector.shape_cast %25 : vector<16xf32> to vector<16x1xf32>
      %cst_19 = arith.constant 6.400000e+01 : f32
      %27 = vector.broadcast %cst_19 : f32 to vector<16x1xf32>
      %28 = arith.divf %26, %27 : vector<16x1xf32>
      %29 = vector.broadcast %28 : vector<16x1xf32> to vector<16x64xf32>
      %30 = arith.subf %24, %29 : vector<16x64xf32>
      %31 = arith.mulf %30, %30 : vector<16x64xf32>
      %cst_20 = arith.constant dense<0.000000e+00> : vector<16xf32>
      %32 = vector.multi_reduction <add>, %31, %cst_20 [1] : vector<16x64xf32> to vector<16xf32>
      %33 = vector.shape_cast %32 : vector<16xf32> to vector<16x1xf32>
      %cst_21 = arith.constant 6.400000e+01 : f32
      %34 = vector.broadcast %cst_21 : f32 to vector<16x1xf32>
      %35 = arith.divf %33, %34 : vector<16x1xf32>
      %cst_22 = arith.constant 9.99999996E-13 : f32
      %36 = vector.broadcast %cst_22 : f32 to vector<16x1xf32>
      %37 = arith.addf %35, %36 : vector<16x1xf32>
      %38 = math.rsqrt %37 : vector<16x1xf32>
      %39 = vector.broadcast %38 : vector<16x1xf32> to vector<16x64xf32>
      %40 = arith.mulf %30, %39 : vector<16x64xf32>
      %c0_23 = arith.constant 0 : index
      %c0_24 = arith.constant 0 : index
      %41 = vector.load %arg5[%c0_23, %c0_24] : memref<1x64xf32, #tpu.memory_space<vmem>>, vector<1x64xf32>
      %42 = vector.broadcast %41 : vector<1x64xf32> to vector<16x64xf32>
      %43 = arith.mulf %40, %42 : vector<16x64xf32>
      %c0_25 = arith.constant 0 : index
      %c0_26 = arith.constant 0 : index
      %44 = vector.load %arg6[%c0_25, %c0_26] : memref<1x64xf32, #tpu.memory_space<vmem>>, vector<1x64xf32>
      %45 = vector.broadcast %44 : vector<1x64xf32> to vector<16x64xf32>
      %46 = arith.addf %43, %45 : vector<16x64xf32>
      %47 = arith.truncf %46 : vector<16x64xf32> to vector<16x64xbf16>
      %c0_27 = arith.constant 0 : index
      %c0_28 = arith.constant 0 : index
      %48 = vector.load %arg10[%c0_27, %c0_28] : memref<16x64xbf16, #tpu.memory_space<vmem>>, vector<16x64xbf16>
      tpu.vector_store %arg10[%c0_27, %c0_28], %47 {strides = array<i32>} : memref<16x64xbf16, #tpu.memory_space<vmem>>, vector<16x64xbf16>,
    } else {
    }
    %c0 = arith.constant 0 : index
    %c0_1 = arith.constant 0 : index
    %3 = vector.load %arg10[%c0, %c0_1] : memref<16x64xbf16, #tpu.memory_space<vmem>>, vector<16x64xbf16>
    %c0_2 = arith.constant 0 : index
    %c0_3 = arith.constant 0 : index
    %4 = vector.load %arg7[%c0_2, %c0_3] : memref<64x128xbf16, #tpu.memory_space<vmem>>, vector<64x128xbf16>
    %cst = arith.constant dense<0.000000e+00> : vector<16x128xf32>
    %5 = tpu.matmul %3, %4, %cst {dimension_numbers = #tpu.dot_dimension_numbers<[1], [0], [0], [1], [0, 0, 1, 1], [], []>} : vector<16x64xbf16>, vector<64x128xbf16>, vector<16x128xf32> -> vector<16x128xf32>
    %c0_4 = arith.constant 0 : index
    %c0_5 = arith.constant 0 : index
    %6 = vector.load %arg8[%c0_4, %c0_5] : memref<1x128xf32, #tpu.memory_space<vmem>>, vector<1x128xf32>
    %7 = vector.broadcast %6 : vector<1x128xf32> to vector<16x128xf32>
    %8 = arith.addf %5, %7 : vector<16x128xf32>
    %9 = arith.truncf %8 : vector<16x128xf32> to vector<16x128xbf16>
    %c0_6 = arith.constant 0 : index
    %c0_7 = arith.constant 0 : index
    %10 = vector.load %arg9[%c0_6, %c0_7] : memref<16x128xbf16, #tpu.memory_space<vmem>>, vector<16x128xbf16>
    tpu.vector_store %arg9[%c0_6, %c0_7], %9 {strides = array<i32>} : memref<16x128xbf16, #tpu.memory_space<vmem>>, vector<16x128xbf16>,
    return
  }
  func.func @transform_0(%arg0: i32, %arg1: i32) -> (i32, i32) {
    %c0_i32 = arith.constant 0 : i32
    %c0_i32_0 = arith.constant 0 : i32
    return %arg0, %c0_i32 : i32, i32
  }
  func.func @transform_1(%arg0: i32, %arg1: i32) -> (i32, i32) {
    %c0_i32 = arith.constant 0 : i32
    %c0_i32_0 = arith.constant 0 : i32
    %c0_i32_1 = arith.constant 0 : i32
    return %c0_i32, %c0_i32_0 : i32, i32
  }
  func.func @transform_2(%arg0: i32, %arg1: i32) -> (i32, i32) {
    %c0_i32 = arith.constant 0 : i32
    %c0_i32_0 = arith.constant 0 : i32
    %c0_i32_1 = arith.constant 0 : i32
    return %c0_i32, %c0_i32_0 : i32, i32
  }
  func.func @transform_3(%arg0: i32, %arg1: i32) -> (i32, i32) {
    %c0_i32 = arith.constant 0 : i32
    %c0_i32_0 = arith.constant 0 : i32
    %c0_i32_1 = arith.constant 0 : i32
    return %c0_i32, %c0_i32_0 : i32, i32
  }
  func.func @transform_4(%arg0: i32, %arg1: i32) -> (i32, i32) {
    %c0_i32 = arith.constant 0 : i32
    %c0_i32_0 = arith.constant 0 : i32
    %c0_i32_1 = arith.constant 0 : i32
    return %c0_i32, %c0_i32_0 : i32, i32
  }
  func.func @transform_5(%arg0: i32, %arg1: i32) -> (i32, i32) {
    %c0_i32 = arith.constant 0 : i32
    %c0_i32_0 = arith.constant 0 : i32
    return %c0_i32, %arg1 : i32, i32
  }
  func.func @transform_6(%arg0: i32, %arg1: i32) -> (i32, i32) {
    %c0_i32 = arith.constant 0 : i32
    %c0_i32_0 = arith.constant 0 : i32
    return %c0_i32, %arg1 : i32, i32
  }
  func.func @transform_7(%arg0: i32, %arg1: i32) -> (i32, i32) {
    %c0_i32 = arith.constant 0 : i32
    return %arg0, %arg1 : i32, i32
  }
}

</mosaic_0001>

<bundles_post_ra>
// kernel: tpu_custom_call.1
= control target key start
LH: loop header
LB: loop body
LE: loop exit
PB: predicated region body
PF: predicated region fallthrough
CT: control target
= control target key end

     0   :  { %12 = vsyncpa [#allocation4], 0  ;;  %s619_s0 = inlined_call_operand.hbm [shape: bf16[16,32], index: 0, kind: input, shape index: {}]   ;;  %s620_s1 = inlined_call_operand.hbm [shape: bf16[32,64], index: 1, kind: input, shape index: {}]   ;;  %s621_s2 = inlined_call_operand.vmem [shape: f32[1,64], index: 2, kind: input, shape index: {}]   ;;  %s622_s3 = inlined_call_operand.vmem [shape: f32[1,64], index: 3, kind: input, shape index: {}]   ;;  %s623_s4 = inlined_call_operand.vmem [shape: f32[1,64], index: 4, kind: input, shape index: {}]   ;;  %s624_s5 = inlined_call_operand.hbm [shape: bf16[64,128], index: 5, kind: input, shape index: {}]   ;;  %s625_s6 = inlined_call_operand.vmem [shape: f32[1,128], index: 6, kind: input, shape index: {}]   ;;  %s626_s7 = inlined_call_operand.hbm [shape: bf16[16,128], index: 7, kind: output, shape index: {}]  }
   0x1   :  { %13 = vsyncpa [#allocation7], 0 }
   0x2   :  { %14 = vsyncpa [#allocation5], 0  ;;  %s486_s24 = smov [#allocation6]   ;;  %s487_s26 = smov [#allocation3]  }
   0x3   :  { %s32_s25 = sshll.u32 %s486_s24, 4  ;;  %s20_s27 = sshll.u32 %s487_s26, 4  ;;  %s33_s25 = int_to_ptr.vmem [resolvable:$true] %s32_s25  ;;  %s534_s27 = int_to_ptr.vmem [resolvable:$true] %s20_s27 }
   0x4   :  { %s392_s30 = scalar_lea.hbm %s620_s1, 256 }
   0x5   :  { %p393_p0 = scmp.ne.s32.totalorder %s620_s1, %s392_s30  ;;  %p396_p1 = scmp.lt.u32.totalorder %s392_s30, %s620_s1 }
   0x7   :  { %p398_p2 = pnand %p396_p1, %p393_p0 }
   0x9   :  { %401 = shalt.err (!%p398_p2)
}
   0xa   :  { %s402_s12 = scalar_lea.vmem %s33_s25, 256  ;;  %p407_p4 = scmp.lt.s32.totalorder %s33_s25, %s33_s25 }
   0xb   :  { %p403_p3 = scmp.ne.s32.totalorder %s33_s25, %s402_s12  ;;  %p408_p5 = scmp.lt.s32.totalorder %s402_s12, %s402_s12 }
   0xd   :  { %p409_p6 = por %p408_p5, %p407_p4 }
   0xf   :  { %p410_p7 = pnand %p409_p6, %p403_p3 }
  0x11   :  { %413 = shalt.err (!%p410_p7)
}
  0x12   :  { %s488_s13 = smov 64   ;;  %s489_s14 = smov 4  }
  0x13   :  { %38 = dma.hbm_to_vmem [thread:$0]  %s620_s1, 256, %s33_s25, [#allocation7], %s488_s13, %s488_s13, %s489_s14  }
  0x14   :  { %s414_s19 = scalar_lea.hbm %s619_s0, 128 }
  0x15   :  { %p415_p8 = scmp.ne.s32.totalorder %s619_s0, %s414_s19  ;;  %p418_p9 = scmp.lt.u32.totalorder %s414_s19, %s619_s0 }
  0x17   :  { %p420_p10 = pnand %p418_p9, %p415_p8 }
  0x19   :  { %423 = shalt.err (!%p420_p10)
}
  0x1a   :  { %s424_s24 = scalar_lea.vmem %s534_s27, 128  ;;  %p429_p12 = scmp.lt.s32.totalorder %s534_s27, %s534_s27 }
  0x1b   :  { %p425_p11 = scmp.ne.s32.totalorder %s534_s27, %s424_s24  ;;  %p430_p13 = scmp.lt.s32.totalorder %s424_s24, %s424_s24 }
  0x1d   :  { %p431_p0 = por %p430_p13, %p429_p12 }
  0x1f   :  { %p432_p1 = pnand %p431_p0, %p425_p11 }
  0x21   :  { %435 = shalt.err (!%p432_p1)
}
  0x22   :  { %26 = dma.hbm_to_vmem [thread:$0]  %s619_s0, 128, %s534_s27, [#allocation4], %s488_s13, %s488_s13, %s489_s14  }
  0x23   :  { %s490_s26 = smov [#allocation8]   ;;  %s436_s8 = scalar_lea.hbm %s624_s5, 512 }
  0x24   :  { %s50_s28 = sshll.u32 %s490_s26, 4  ;;  %p437_p2 = scmp.ne.s32.totalorder %s624_s5, %s436_s8  ;;  %s51_s28 = int_to_ptr.vmem [resolvable:$true] %s50_s28 }
  0x25   :  { %p440_p3 = scmp.lt.u32.totalorder %s436_s8, %s624_s5 }
  0x27   :  { %p442_p4 = pnand %p440_p3, %p437_p2 }
  0x29   :  { %445 = shalt.err (!%p442_p4)
}
  0x2a   :  { %s446_s15 = scalar_lea.vmem %s51_s28, 512  ;;  %p451_p6 = scmp.lt.s32.totalorder %s51_s28, %s51_s28 }
  0x2b   :  { %p447_p5 = scmp.ne.s32.totalorder %s51_s28, %s446_s15  ;;  %p452_p7 = scmp.lt.s32.totalorder %s446_s15, %s446_s15 }
  0x2d   :  { %p453_p8 = por %p452_p7, %p451_p6 }
  0x2f   :  { %p454_p9 = pnand %p453_p8, %p447_p5 }
  0x31   :  { %457 = shalt.err (!%p454_p9)
}
  0x32   :  { %56 = dma.hbm_to_vmem [thread:$0]  %s624_s5, 512, %s51_s28, [#allocation7], %s488_s13, %s488_s13, %s489_s14  }
  0x33   :  { %480 = dma.done.wait [#allocation4], 128  }
  0x34   :  { %481 = vsyncadd [#allocation4], 4294967168 }
  0x35   :  { %482 = dma.done.wait [#allocation7], 768  }
  0x36   :  { %483 = vsyncadd [#allocation7], 4294966528  ;;  %v491_v0 = vmov 0.0   ;;  %vm492_vm0 = vmmov 0   ;;  %v377_v1 = vld [vmem:[#allocation6] sm:$0xff]   ;;  %v378_v2 = vld [vmem:[#allocation6 + $0x8] sm:$0xff]  }
  0x37   :  { %349 = vmatprep.subr.bf16.mxu0 %v491_v0  ;;  %353 = vmatprep.mubr.msk.bf16.mxu0 %vm492_vm0, %v491_v0  ;;  %v379_v3 = vld [vmem:[#allocation3] sm:$0xff]   ;;  %vm103_vm1 = vcmask 261120   ;;  %v319_v4 = vld [vmem:[%s621_s2] ss:$0 sm:$0xff]  ;;  %vm158_vm2 = vcmask 523264   ;;  %v382_v35 = vld [vmem:[#allocation8 + $0x10] sm:$0xff]  }
  0x38   :  { %357 = vmatprep.subr.bf16.mxu1 %v491_v0  ;;  %365 = vmatprep.mubr.msk.bf16.mxu1 %vm492_vm0, %v491_v0  ;;  %v380_v33 = vld [vmem:[#allocation8] sm:$0xff]   ;;  %v381_v34 = vld [vmem:[#allocation8 + $0x8] sm:$0xff]   ;;  %v383_v36 = vld [vmem:[#allocation8 + $0x18] sm:$0xff]  }
  0x39   :  { %350 = vmatpush3.bf16.msra.mxu0 %v377_v1  ;;  %358 = vmatpush3.bf16.msra.mxu1 %v380_v33  ;;  %v324_v45 = vld [vmem:[%s622_s3] ss:$0 sm:$0xff]  ;;  %s493_s3 = smov [#allocation9]  }
  0x3a   :  { %351 = vmatprep.subr.bf16.mxu0 %v491_v0  ;;  %359 = vmatprep.subr.bf16.mxu1 %v491_v0  ;;  %v325_v49 = vld [vmem:[%s623_s4] ss:$0 sm:$0xff]  ;;  %s306_s22 = sshll.u32 %s493_s3, 4  ;;  %s307_s22 = int_to_ptr.vmem [resolvable:$true] %s306_s22 }
  0x3b   :  { %v326_v55 = vld [vmem:[%s625_s6] ss:$0 sm:$0xff]  ;;  %s458_s4 = scalar_lea.vmem %s307_s22, 128  ;;  %p463_p11 = scmp.lt.s32.totalorder %s307_s22, %s307_s22 }
  0x3c   :  { %p459_p10 = scmp.ne.s32.totalorder %s307_s22, %s458_s4  ;;  %p464_p12 = scmp.lt.s32.totalorder %s458_s4, %s458_s4 }
  0x3d   :  { %352 = vmatpush3.bf16.msra.mxu0 %v378_v2  ;;  %360 = vmatpush3.bf16.msra.mxu1 %v381_v34 }
  0x3e   :  { %361 = vmatprep.subr.bf16.mxu1 %v491_v0  ;;  %p465_p13 = por %p464_p12, %p463_p11 }
  0x40   :  { %354 = vmatmul.mubr.msk.bf16.vlgmr.msra.gmra.mrb[0].mxu0 %vm103_vm1, %v379_v3  ;;  %p466_p0 = pnand %p465_p13, %p459_p10 }
  0x41   :  { %362 = vmatpush3.bf16.msra.mxu1 %v382_v35 }
  0x42   :  { %363 = vmatprep.subr.bf16.mxu1 %v491_v0 }
  0x45   :  { %364 = vmatpush3.bf16.msra.mxu1 %v383_v36 }
 0x113   :  { %v141_v5 = vpop.f32.mrb[0].mxu0 }
 0x114   :  { %v142_v6 = vadd.f32 %v319_v4, %v141_v5  ;;  %v355_v7 = vpop.f32.mrb[1].mxu0 }
 0x115   :  { %v144_v8 = vpop.f32.mrb[2].mxu0 }
 0x116   :  { %v150_v9 = vmul.f32 0.70710677, %v142_v6  ;;  %v145_v10 = vadd.f32 %v319_v4, %v144_v8  ;;  %v356_v11 = vpop.f32.mrb[3].mxu0  ;;  %v148_v14 = vmul.f32 0.5, %v142_v6 }
 0x118   :  { %384 = verf.f32 %v150_v9  ;;  %v151_v12 = vmul.f32 0.70710677, %v145_v10  ;;  %v149_v17 = vmul.f32 0.5, %v145_v10 }
 0x11a   :  { %386 = verf.f32 %v151_v12 }
 0x122   :  { %v385_v13 = vpop.eup %384 }
 0x123   :  { %v154_v15 = vadd.f32 1.0, %v385_v13 }
 0x124   :  { %v387_v16 = vpop.eup %386 }
 0x125   :  { %v156_v18 = vmul.f32 %v154_v15, %v148_v14  ;;  %v155_v19 = vadd.f32 1.0, %v387_v16 }
 0x127   :  { %v159_v20 = vsel %vm158_vm2, %v156_v18, 0.0  ;;  %v157_v21 = vmul.f32 %v155_v19, %v149_v17 }
 0x128   :  { %160 = vadd.xlane.f32.xlu0 %v159_v20 }
 0x129   :  { %v162_v22 = vsel %vm158_vm2, %v157_v21, 0.0 }
 0x12c   :  { %163 = vadd.xlane.f32.xlu0 %v162_v22 }
 0x1b5   :  { %v161_v23 = vpop.xlane.xlu0 %160 }
 0x1b6   :  { %v166_v24 = vmul.f32 0.015625, %v161_v23 }
 0x1b8   :  { %v168_v25 = vsub.f32 %v156_v18, %v166_v24 }
 0x1b9   :  { %v164_v26 = vpop.xlane.xlu0 %163 }
 0x1ba   :  { %v167_v27 = vmul.f32 0.015625, %v164_v26  ;;  %v170_v28 = vmul.f32 %v168_v25, %v168_v25 }
 0x1bc   :  { %v169_v29 = vsub.f32 %v157_v21, %v167_v27  ;;  %v172_v30 = vsel %vm158_vm2, %v170_v28, 0.0 }
 0x1bd   :  { %173 = vadd.xlane.f32.xlu1 %v172_v30 }
 0x1be   :  { %v171_v31 = vmul.f32 %v169_v29, %v169_v29 }
 0x1c0   :  { %v175_v32 = vsel %vm158_vm2, %v171_v31, 0.0 }
 0x1c1   :  { %176 = vadd.xlane.f32.xlu1 %v175_v32 }
 0x24a   :  { %v174_v37 = vpop.xlane.xlu1 %173 }
 0x24b   :  { %v178_v38 = vmul.f32 0.015625, %v174_v37 }
 0x24d   :  { %v180_v39 = vadd.f32 1e-12, %v178_v38 }
 0x24e   :  { %v177_v40 = vpop.xlane.xlu1 %176 }
 0x24f   :  { %388 = vrsqrt.f32 %v180_v39  ;;  %v179_v41 = vmul.f32 0.015625, %v177_v40 }
 0x251   :  { %v181_v42 = vadd.f32 1e-12, %v179_v41 }
 0x253   :  { %390 = vrsqrt.f32 %v181_v42 }
 0x259   :  { %v389_v43 = vpop.eup %388 }
 0x25a   :  { %v184_v44 = vmul.f32 %v389_v43, %v168_v25 }
 0x25c   :  { %v193_v47 = vmul.f32 %v324_v45, %v184_v44 }
 0x25d   :  { %v391_v46 = vpop.eup %390 }
 0x25e   :  { %v185_v48 = vmul.f32 %v391_v46, %v169_v29  ;;  %v202_v51 = vadd.f32 %v325_v49, %v193_v47 }
 0x260   :  { %v194_v50 = vmul.f32 %v324_v45, %v185_v48 }
 0x262   :  { %v203_v52 = vadd.f32 %v325_v49, %v194_v50 }
 0x264   :  { %v204_v53 = vpack.c.bf16 %v203_v52, %v202_v51 }
 0x266   :  { %205 = vst.msk [vmem:[#allocation2] sm:$0xff] %vm158_vm2, %v204_v53 }
 0x26d   :  { %v206_v54 = vld [vmem:[#allocation2] sm:$0xff] }
 0x26e   :  { %366 = vmatmul.mubr.msk.bf16.vlgmr.msra.gmra.mrb[0].mxu1 %vm158_vm2, %v206_v54 }
 0x341   :  { %v284_v56 = vpop.f32.mrb[0].mxu1 }
 0x342   :  { %v367_v57 = vpop.f32.mrb[1].mxu1  ;;  %v285_v59 = vadd.f32 %v326_v55, %v284_v56 }
 0x343   :  { %v287_v58 = vpop.f32.mrb[2].mxu1 }
 0x344   :  { %v288_v60 = vadd.f32 %v326_v55, %v287_v58  ;;  %v368_v61 = vpop.f32.mrb[3].mxu1 }
 0x346   :  { %v339_v62 = vpack.c.bf16 %v288_v60, %v285_v59 }
 0x348   :  { %340 = vst [vmem:[#allocation9] sm:$0xff] %v339_v62  }
 0x349   :  { %469 = shalt.err (!%p466_p0)
}
 0x34a   :  { %s470_s24 = scalar_lea.hbm %s626_s7, 128 }
 0x34b   :  { %p471_p1 = scmp.ne.s32.totalorder %s626_s7, %s470_s24  ;;  %p474_p2 = scmp.lt.u32.totalorder %s470_s24, %s626_s7 }
 0x34d   :  { %p476_p3 = pnand %p474_p2, %p471_p1 }
 0x34f   :  { %479 = shalt.err (!%p476_p3)
}
 0x350   :  { %312 = dma.vmem_to_hbm [thread:$0]  %s307_s22, 128, %s626_s7, [#allocation5], %s488_s13, %s488_s13, %s489_s14  }
 0x351   :  { %484 = dma.done.wait [#allocation5], 128  }
 0x352   :  { %485 = vsyncadd [#allocation5], 4294967168 }
 0x353   :  { %316 = vsyncpa [#allocation4], 1 }
 0x354   :  { %317 = vsyncpa [#allocation7], 1 }
 0x355   :  { %318 = vsyncpa [#allocation5], 1 }

</bundles_post_ra>
